<compile_context>
chip_gen: v5e
topology: v5e:2x2
jax: 0.10.0
libtpu: 0.0.40
codegen_flags: <defaults>
</compile_context>

<pallas_src>
import functools

import jax
import jax.numpy as jnp
from jax.experimental import pallas as pl
from jax.experimental.pallas import tpu as pltpu


def _grn_kernel(x_ref, gamma_ref, beta_ref, out_ref, sumsq_ref, coeff_ref,
                *, pack, channels, eps, mean_div):
    # x_ref:     (1, tile_rows, L)  one spatial tile of one batch element
    # gamma_ref: (1, L)  f32, pre-tiled/padded to the packed lane layout
    # beta_ref:  (1, L)  f32, pre-tiled/padded to the packed lane layout
    # out_ref:   (1, tile_rows, L)
    # sumsq_ref: (1, L)  f32 scratch — per-lane sum of squares accumulator
    # coeff_ref: (1, L)  f32 scratch — fused epilogue coefficient gamma*Nx + 1
    phase = pl.program_id(1)
    t = pl.program_id(2)

    @pl.when(jnp.logical_and(phase == 0, t == 0))
    def _():
        sumsq_ref[...] = jnp.zeros_like(sumsq_ref)

    # ---- Phase 0: accumulate sum of squares over spatial tiles -------------
    @pl.when(phase == 0)
    def _():
        x = x_ref[0].astype(jnp.float32)                        # (rows, L)
        sumsq_ref[...] += jnp.sum(x * x, axis=0, keepdims=True)  # sublane reduce

    # ---- Phase 1, first tile: compute Nx once, fuse epilogue coefficient ---
    @pl.when(jnp.logical_and(phase == 1, t == 0))
    def _():
        # Fold the `pack` channel replicas with a log2(pack) doubling tree of
        # XLU lane rotations (lanes with equal lane%C belong to one channel).
        grouped = sumsq_ref[...]
        shift = channels
        while shift < pack * channels:
            grouped = grouped + pltpu.roll(grouped, shift=shift, axis=1)
            shift *= 2
        gx = jnp.sqrt(grouped)                                   # (1, L)
        # Mean over real channels: each real channel appears `pack` times and
        # padded channels contribute 0, so sum(gx)/ (pack*C) == mean_c Gx[c].
        mean = jnp.sum(gx, axis=-1, keepdims=True) * (1.0 / mean_div)
        nx = gx / (mean + eps)
        coeff_ref[...] = gamma_ref[...] * nx + 1.0

    # ---- Phase 1: apply  out = x * (gamma*Nx + 1) + beta --------------------
    @pl.when(phase == 1)
    def _():
        x = x_ref[0].astype(jnp.float32)
        out_ref[0] = (x * coeff_ref[...] + beta_ref[...]).astype(out_ref.dtype)


def global_response_norm(x, gamma, beta, *, eps=1e-6, max_tile_rows=1024):
    """Forward pass of GlobalResponseNorm.

    x:     (B, H, W, C) channels-last.
    gamma: broadcastable to (1, 1, 1, C)   (PyTorch parameter shape)
    beta:  broadcastable to (1, 1, 1, C)
    """
    B, H, W, C = x.shape
    S = H * W
    g = jnp.asarray(gamma).reshape(C).astype(jnp.float32)
    b = jnp.asarray(beta).reshape(C).astype(jnp.float32)

    # ---- Lane-dense layout --------------------------------------------------
    pack = 1
    if C < 128 and 128 % C == 0 and S % (128 // C) == 0:
        pack = 128 // C
    if pack > 1:
        # (B, S, C) -> (B, S/pack, pack*C): pure contiguous reshape, no transpose.
        L = pack * C
        R = S // pack
        x_p = x.reshape(B, R, L)
        g_p = jnp.tile(g, pack).reshape(1, L)
        b_p = jnp.tile(b, pack).reshape(1, L)
    else:
        # Fallback: pad the channel axis up to a multiple of 128 so stores stay
        # unmasked/full-lane; zero pad channels drop out of the reduction and
        # are sliced away afterwards.
        L = ((C + 127) // 128) * 128
        R = S
        x_p = x.reshape(B, S, C)
        if L != C:
            x_p = jnp.pad(x_p, ((0, 0), (0, 0), (0, L - C)))
            g_p = jnp.pad(g, (0, L - C)).reshape(1, L)
            b_p = jnp.pad(b, (0, L - C)).reshape(1, L)
        else:
            g_p = g.reshape(1, L)
            b_p = b.reshape(1, L)

    # ---- Spatial tiling (keeps VMEM small on every TPU generation) ----------
    if R <= max_tile_rows:
        tile_rows = R          # block == full dim, no (8,128) divisibility issue
        R_pad = R
    else:
        tile_rows = 0
        start = max_tile_rows - (max_tile_rows % 8)
        for t in range(start, 7, -8):          # divisor of R, multiple of 8
            if R % t == 0:
                tile_rows = t
                break
        if tile_rows == 0:
            tile_rows = max(8, min(512, start))
            R_pad = ((R + tile_rows - 1) // tile_rows) * tile_rows
            x_p = jnp.pad(x_p, ((0, 0), (0, R_pad - R), (0, 0)))  # zero rows
        else:
            R_pad = R
    T = R_pad // tile_rows

    itemsize = jnp.dtype(x.dtype).itemsize
    cost = pl.CostEstimate(
        flops=int(8 * B * S * C),
        transcendentals=int(B * L),
        bytes_accessed=int(3 * B * S * C * itemsize),  # 2 reads of x + 1 write
    )

    # Output index trick: during phase 0 the output block index is pinned to
    # (b, 0, 0) so no garbage writebacks happen; phase 1 visits each tile once.
    out = pl.pallas_call(
        functools.partial(_grn_kernel, pack=pack, channels=C, eps=eps,
                          mean_div=float(pack * C)),
        out_shape=jax.ShapeDtypeStruct((B, R_pad, L), x.dtype),
        grid_spec=pltpu.PrefetchScalarGridSpec(
            num_scalar_prefetch=0,
            grid=(B, 2, T),
            in_specs=[
                pl.BlockSpec((1, tile_rows, L), lambda i, p, t: (i, t, 0)),  # x tile
                pl.BlockSpec((1, L), lambda i, p, t: (0, 0)),                # gamma
                pl.BlockSpec((1, L), lambda i, p, t: (0, 0)),                # beta
            ],
            out_specs=pl.BlockSpec((1, tile_rows, L),
                                   lambda i, p, t: (i, t * p, 0)),
            scratch_shapes=[
                pltpu.VMEM((1, L), jnp.float32),   # sum-of-squares accumulator
                pltpu.VMEM((1, L), jnp.float32),   # fused coefficient gamma*Nx+1
            ],
        ),
        compiler_params=pltpu.CompilerParams(
            # Batch is independent (megacore-shardable); phase/spatial axes share
            # the accumulator scratch so they must stay on one core, in order.
            dimension_semantics=("parallel", "arbitrary", "arbitrary"),
            vmem_limit_bytes=32 * 1024 * 1024,
        ),
        cost_estimate=cost,
        # TODO(synk): expose a second parallel axis (or core_map) so B==1 shapes
        # still use both v7x TensorCores; sweep pipeline_mode=pl.Buffered(3) on
        # the x input; add input_output_aliases when the caller can donate x.
    )(x_p, g_p, b_p)

    if pack > 1:
        return out[:, :R, :].reshape(B, H, W, C)
    return out[:, :S, :C].reshape(B, H, W, C)


def _reference_grn(x, gamma, beta, eps=1e-6):
    # Pure-JAX mirror of the PyTorch forward.
    gx = jnp.sqrt(jnp.sum(jnp.square(x), axis=(1, 2), keepdims=True))   # (B,1,1,C)
    nx = gx / (jnp.mean(gx, axis=-1, keepdims=True) + eps)
    return gamma * (x * nx) + beta + x


if __name__ == "__main__":
    B, H, W, C = 2, 16, 16, 32
    key = jax.random.PRNGKey(0)
    kx, kg, kb = jax.random.split(key, 3)

    x = jax.random.normal(kx, (B, H, W, C), dtype=jnp.float32)
    # The PyTorch module initializes gamma/beta to zeros (output would equal x);
    # use random parameters here so the full computation path is exercised.
    gamma = jax.random.normal(kg, (1, 1, 1, C), dtype=jnp.float32)
    beta = jax.random.normal(kb, (1, 1, 1, C), dtype=jnp.float32)

    out = global_response_norm(x, gamma, beta)
    jax.block_until_ready(out)
    ref = _reference_grn(x, gamma, beta)
    assert out.shape == x.shape
    assert jnp.allclose(out, ref, atol=3e-5, rtol=1e-5), float(
        jnp.max(jnp.abs(out - ref)))

    # Also exercise the multi-tile two-phase path (force small spatial tiles).
    out2 = global_response_norm(x, gamma, beta, max_tile_rows=16)
    jax.block_until_ready(out2)
    assert jnp.allclose(out2, ref, atol=3e-5, rtol=1e-5), float(
        jnp.max(jnp.abs(out2 - ref)))

    print("KERNEL_OK")
</pallas_src>

<mosaic_0001>
module attributes {stable_mosaic.version = 11 : i64} {
  func.func @_grn_kernel(%arg0: i32, %arg1: i32, %arg2: i32, %arg3: memref<1x64x128xf32, #tpu.memory_space<vmem>>, %arg4: memref<1x128xf32, #tpu.memory_space<vmem>>, %arg5: memref<1x128xf32, #tpu.memory_space<vmem>>, %arg6: memref<1x64x128xf32, #tpu.memory_space<vmem>>, %arg7: memref<1x128xf32, #tpu.memory_space<vmem>>, %arg8: memref<1x128xf32, #tpu.memory_space<vmem>>) attributes {dimension_semantics = [#tpu.dimension_semantics<parallel>, #tpu.dimension_semantics<arbitrary>, #tpu.dimension_semantics<arbitrary>], iteration_bounds = array<i64: 2, 2, 1>, scalar_prefetch = 0 : i64, scratch_operands = 2 : i64, tpu.core_type = #tpu.core_type<tc>, window_params = [{transform_indices = @transform_0, window_bounds = array<i64: 1, 64, 128>}, {pipeline_mode = #tpu.pipeline_mode<synchronous>, transform_indices = @transform_1, window_bounds = array<i64: 1, 128>}, {pipeline_mode = #tpu.pipeline_mode<synchronous>, transform_indices = @transform_2, window_bounds = array<i64: 1, 128>}, {transform_indices = @transform_3, window_bounds = array<i64: 1, 64, 128>}]} {
    %c0_i32 = arith.constant 0 : i32
    %0 = arith.cmpi eq, %arg1, %c0_i32 : i32
    %c0_i32_0 = arith.constant 0 : i32
    %1 = arith.cmpi eq, %arg2, %c0_i32_0 : i32
    %2 = arith.andi %0, %1 : i1
    %3 = arith.extui %2 : i1 to i32
    %c0_i32_1 = arith.constant 0 : i32
    %4 = arith.cmpi ne, %3, %c0_i32_1 : i32
    scf.if %4 {
      %cst = arith.constant 0.000000e+00 : f32
      %16 = vector.broadcast %cst : f32 to vector<1x128xf32>
      %c0 = arith.constant 0 : index
      %c0_8 = arith.constant 0 : index
      %17 = vector.load %arg7[%c0, %c0_8] : memref<1x128xf32, #tpu.memory_space<vmem>>, vector<1x128xf32>
      tpu.vector_store %arg7[%c0, %c0_8], %16 {strides = array<i32>} : memref<1x128xf32, #tpu.memory_space<vmem>>, vector<1x128xf32>,
    } else {
    }
    %c0_i32_2 = arith.constant 0 : i32
    %5 = arith.cmpi eq, %arg1, %c0_i32_2 : i32
    %6 = arith.extui %5 : i1 to i32
    %c0_i32_3 = arith.constant 0 : i32
    %7 = arith.cmpi ne, %6, %c0_i32_3 : i32
    scf.if %7 {
      %c0 = arith.constant 0 : index
      %c0_8 = arith.constant 0 : index
      %c0_9 = arith.constant 0 : index
      %16 = vector.load %arg3[%c0, %c0_8, %c0_9] : memref<1x64x128xf32, #tpu.memory_space<vmem>>, vector<1x64x128xf32>
      %17 = vector.shape_cast %16 : vector<1x64x128xf32> to vector<64x128xf32>
      %c0_10 = arith.constant 0 : index
      %c0_11 = arith.constant 0 : index
      %18 = vector.load %arg7[%c0_10, %c0_11] : memref<1x128xf32, #tpu.memory_space<vmem>>, vector<1x128xf32>
      %19 = arith.mulf %17, %17 : vector<64x128xf32>
      %cst = arith.constant dense<0.000000e+00> : vector<128xf32>
      %20 = vector.multi_reduction <add>, %19, %cst [0] : vector<64x128xf32> to vector<128xf32>
      %21 = vector.shape_cast %20 : vector<128xf32> to vector<1x128xf32>
      %22 = arith.addf %18, %21 : vector<1x128xf32>
      %c0_12 = arith.constant 0 : index
      %c0_13 = arith.constant 0 : index
      %23 = vector.load %arg7[%c0_12, %c0_13] : memref<1x128xf32, #tpu.memory_space<vmem>>, vector<1x128xf32>
      tpu.vector_store %arg7[%c0_12, %c0_13], %22 {strides = array<i32>} : memref<1x128xf32, #tpu.memory_space<vmem>>, vector<1x128xf32>,
    } else {
    }
    %c1_i32 = arith.constant 1 : i32
    %8 = arith.cmpi eq, %arg1, %c1_i32 : i32
    %c0_i32_4 = arith.constant 0 : i32
    %9 = arith.cmpi eq, %arg2, %c0_i32_4 : i32
    %10 = arith.andi %8, %9 : i1
    %11 = arith.extui %10 : i1 to i32
    %c0_i32_5 = arith.constant 0 : i32
    %12 = arith.cmpi ne, %11, %c0_i32_5 : i32
    scf.if %12 {
      %c0 = arith.constant 0 : index
      %c0_8 = arith.constant 0 : index
      %16 = vector.load %arg7[%c0, %c0_8] : memref<1x128xf32, #tpu.memory_space<vmem>>, vector<1x128xf32>
      %c32_i32 = arith.constant 32 : i32
      %17 = tpu.dynamic_rotate %16 by %c32_i32 dim 1 : vector<1x128xf32>, i32 -> vector<1x128xf32>
      %18 = arith.addf %16, %17 : vector<1x128xf32>
      %c64_i32 = arith.constant 64 : i32
      %19 = tpu.dynamic_rotate %18 by %c64_i32 dim 1 : vector<1x128xf32>, i32 -> vector<1x128xf32>
      %20 = arith.addf %18, %19 : vector<1x128xf32>
      %21 = math.sqrt %20 : vector<1x128xf32>
      %cst = arith.constant dense<0.000000e+00> : vector<1xf32>
      %22 = vector.multi_reduction <add>, %21, %cst [1] : vector<1x128xf32> to vector<1xf32>
      %23 = vector.shape_cast %22 : vector<1xf32> to vector<1x1xf32>
      %cst_9 = arith.constant 7.812500e-03 : f32
      %24 = vector.broadcast %cst_9 : f32 to vector<1x1xf32>
      %25 = arith.mulf %23, %24 : vector<1x1xf32>
      %cst_10 = arith.constant 9.99999997E-7 : f32
      %26 = vector.broadcast %cst_10 : f32 to vector<1x1xf32>
      %27 = arith.addf %25, %26 : vector<1x1xf32>
      %28 = vector.broadcast %27 : vector<1x1xf32> to vector<1x128xf32>
      %29 = arith.divf %21, %28 : vector<1x128xf32>
      %c0_11 = arith.constant 0 : index
      %c0_12 = arith.constant 0 : index
      %30 = vector.load %arg4[%c0_11, %c0_12] : memref<1x128xf32, #tpu.memory_space<vmem>>, vector<1x128xf32>
      %31 = arith.mulf %30, %29 : vector<1x128xf32>
      %cst_13 = arith.constant 1.000000e+00 : f32
      %32 = vector.broadcast %cst_13 : f32 to vector<1x128xf32>
      %33 = arith.addf %31, %32 : vector<1x128xf32>
      %c0_14 = arith.constant 0 : index
      %c0_15 = arith.constant 0 : index
      %34 = vector.load %arg8[%c0_14, %c0_15] : memref<1x128xf32, #tpu.memory_space<vmem>>, vector<1x128xf32>
      tpu.vector_store %arg8[%c0_14, %c0_15], %33 {strides = array<i32>} : memref<1x128xf32, #tpu.memory_space<vmem>>, vector<1x128xf32>,
    } else {
    }
    %c1_i32_6 = arith.constant 1 : i32
    %13 = arith.cmpi eq, %arg1, %c1_i32_6 : i32
    %14 = arith.extui %13 : i1 to i32
    %c0_i32_7 = arith.constant 0 : i32
    %15 = arith.cmpi ne, %14, %c0_i32_7 : i32
    scf.if %15 {
      %c0 = arith.constant 0 : index
      %c0_8 = arith.constant 0 : index
      %c0_9 = arith.constant 0 : index
      %16 = vector.load %arg3[%c0, %c0_8, %c0_9] : memref<1x64x128xf32, #tpu.memory_space<vmem>>, vector<1x64x128xf32>
      %17 = vector.shape_cast %16 : vector<1x64x128xf32> to vector<64x128xf32>
      %c0_10 = arith.constant 0 : index
      %c0_11 = arith.constant 0 : index
      %18 = vector.load %arg8[%c0_10, %c0_11] : memref<1x128xf32, #tpu.memory_space<vmem>>, vector<1x128xf32>
      %19 = vector.broadcast %18 : vector<1x128xf32> to vector<64x128xf32>
      %20 = arith.mulf %17, %19 : vector<64x128xf32>
      %c0_12 = arith.constant 0 : index
      %c0_13 = arith.constant 0 : index
      %21 = vector.load %arg5[%c0_12, %c0_13] : memref<1x128xf32, #tpu.memory_space<vmem>>, vector<1x128xf32>
      %22 = vector.broadcast %21 : vector<1x128xf32> to vector<64x128xf32>
      %23 = arith.addf %20, %22 : vector<64x128xf32>
      %c0_14 = arith.constant 0 : index
      %c0_15 = arith.constant 0 : index
      %c0_16 = arith.constant 0 : index
      %24 = vector.load %arg6[%c0_14, %c0_15, %c0_16] : memref<1x64x128xf32, #tpu.memory_space<vmem>>, vector<1x64x128xf32>
      %25 = vector.shape_cast %24 : vector<1x64x128xf32> to vector<64x128xf32>
      %26 = vector.shape_cast %23 : vector<64x128xf32> to vector<1x64x128xf32>
      tpu.vector_store %arg6[%c0_14, %c0_15, %c0_16], %26 {strides = array<i32>} : memref<1x64x128xf32, #tpu.memory_space<vmem>>, vector<1x64x128xf32>,
    } else {
    }
    return
  }
  func.func @transform_0(%arg0: i32, %arg1: i32, %arg2: i32) -> (i32, i32, i32) {
    %c0_i32 = arith.constant 0 : i32
    %c0_i32_0 = arith.constant 0 : i32
    return %arg0, %arg2, %c0_i32 : i32, i32, i32
  }
  func.func @transform_1(%arg0: i32, %arg1: i32, %arg2: i32) -> (i32, i32) {
    %c0_i32 = arith.constant 0 : i32
    %c0_i32_0 = arith.constant 0 : i32
    %c0_i32_1 = arith.constant 0 : i32
    return %c0_i32, %c0_i32_0 : i32, i32
  }
  func.func @transform_2(%arg0: i32, %arg1: i32, %arg2: i32) -> (i32, i32) {
    %c0_i32 = arith.constant 0 : i32
    %c0_i32_0 = arith.constant 0 : i32
    %c0_i32_1 = arith.constant 0 : i32
    return %c0_i32, %c0_i32_0 : i32, i32
  }
  func.func @transform_3(%arg0: i32, %arg1: i32, %arg2: i32) -> (i32, i32, i32) {
    %0 = arith.muli %arg2, %arg1 : i32
    %c0_i32 = arith.constant 0 : i32
    %c0_i32_0 = arith.constant 0 : i32
    return %arg0, %0, %c0_i32 : i32, i32, i32
  }
}

</mosaic_0001>

<bundles_post_ra>
// kernel: tpu_custom_call.1
= control target key start
LH: loop header
LB: loop body
LE: loop exit
PB: predicated region body
PF: predicated region fallthrough
CT: control target
= control target key end

     0   :  { %s1016_s0 = inlined_call_operand.hbm [shape: f32[2,64,128], index: 0, kind: input, shape index: {}]   ;;  %s1017_s1 = inlined_call_operand.hbm [shape: f32[1,128], index: 1, kind: input, shape index: {}]   ;;  %s1018_s2 = inlined_call_operand.vmem [shape: f32[1,128], index: 2, kind: input, shape index: {}]   ;;  %s1019_s3 = inlined_call_operand.hbm [shape: f32[2,64,128], index: 3, kind: output, shape index: {}]  }
   0x1   :  { %1022 = sst [smem:[#allocation16_spill]] %s1017_s1 }
   0x2   :  { %8 = vsyncpa [#allocation5], 0 }
   0x3   :  { %10 = vsyncpa [#allocation5 + $0x1], 0 }
   0x4   :  { %11 = vsyncpa [#allocation8], 0 }
   0x5   :  { %12 = vsyncpa [#allocation6], 0 }
   0x6   :  { %14 = vsyncpa [#allocation6 + $0x1], 0  ;;  %s811_s12 = smov 0   ;;  %s813_s13 = smov 0  }
   0x7   :  { %s815_s14 = smov 0   ;;  %s817_s15 = smov 0  }
   0x8   :  { %s819_s16 = smov 0   ;;  %s821_s17 = smov 0  }
   0x9   :  { %s823_s18 = smov 0   ;;  %s825_s19 = smov 0  }
   0xa LB: > { %1023 = sst [smem:[#allocation13_spill]] %s773_s17  ;;  %s492_s20 = sadd.s32 4294967295, %s781_s19   ;;  %s781_s19 = sphi %s825_s19, %s20_s19   ;;  %s777_s18 = sphi %s823_s18, %s1041_s18   ;;  %s773_s17 = sphi %s821_s17, %s1036_s17   ;;  %s769_s16 = sphi %s819_s16, %s1040_s16   ;;  %s765_s15 = sphi %s817_s15, %s1035_s15   ;;  %s761_s14 = sphi %s815_s14, %s1039_s14   ;;  %s757_s13 = sphi %s813_s13, %s1038_s13   ;;  %s753_s12 = sphi %s811_s12, %s1037_s12  }
   0xb   : > { %s493_s21 = sadd.s32 4294967294, %s781_s19   ;;  %s48_s22 = sadd.s32 1, %s761_s14 }
   0xc   : > { %p55_p0 = scmp.ne.s32.totalorder %s761_s14, %s757_s13  ;;  %p56_p1 = scmp.eq.s32.totalorder %s781_s19, 0 }
   0xd   : > { %p61_p2 = scmp.ne.s32.totalorder %s757_s13, %s753_s12  ;;  %p859_p3 = scmp.eq.s32.totalorder %s492_s20, 0 }
   0xe   : > { %p131_p4 = scmp.eq.s32.totalorder %s492_s20, 3  ;;  %p863_p5 = por %p56_p1, %p55_p0 }
   0xf   : > { %p137_p6 = scmp.eq.s32.totalorder %s493_s21, 3  ;;  %p869_p7 = por %p859_p3, %p61_p2 }
  0x10   : > { %p873_p8 = por %p131_p4, %p55_p0  ;;  %p494_p10 = scmp.ge.s32.totalorder %s781_s19, 1 }
  0x11   : > { %p877_p9 = por %p137_p6, %p61_p2  ;;  %p144_p11 = scmp.lt.s32.totalorder %s781_s19, 5 }
  0x12   : > { %s1030_s1 = sld [smem:[#allocation16_spill]]  ;;  %s783_s5 = smov [#allocation7]  }
  0x13   : > { %s1028_s27 = scalar_select %p877_p9, 1, 0 }
  0x14   : > { %p886_p12 = pnand %p494_p10, %p144_p11  ;;  %s158_s6 = sshll.u32 %s783_s5, 4  ;;  %s159_s6 = int_to_ptr.vmem [resolvable:$true] %s158_s6 }
  0x15   : > { %1029 = sst [smem:[#allocation14_spill]] %s1028_s27  ;;  %p538_p0 = scmp.lt.s32.totalorder %s781_s19, 4 }
  0x16   : > { %p525_p13 = pneg %p886_p12  ;;  %s35_s8 = sadd.s32 1, %s773_s17 }
  0x17   : > { %p897_p2 = pnand %p538_p0, %p863_p5  ;;  %p37_p4 = scmp.ge.s32.totalorder %s35_s8, 2 }
  0x18   : > { %s156_s30 = sshll.u32 %s1030_s1, 4  ;;  %p526_p1 = pnand %p525_p13, %p859_p3  ;;  %s157_s30 = int_to_ptr.hbm [resolvable:$true] %s156_s30 }
  0x19   : > { %s39_s9 = sadd.s32 1, %s777_s18  ;;  %s172_s10 = sand.u32 1, %s761_s14  }
  0x1a   : > { %528 = dma.hbm_to_vmem [thread:$0]  (!%p526_p1), %s157_s30, 16, %s159_s6, [#allocation8]  }
  0x1b   : > { %s513_s11 = sshll.u32 %s777_s18, 6  ;;  %s1043_s8 = smov (%p37_p4, %s35_s8), 0 }
  0x1c   : > { %1033 = sst [smem:[#allocation15_spill]] %s1043_s8  ;;  %s1045_s9 = smov (!%p37_p4, %s39_s9), %s777_s18 }
  0x1d   : > { %s497_s20 = sshll.u32 %s172_s10, 6  ;;  %p41_p6 = scmp.ge.s32.totalorder %s1045_s9, 2 }
  0x1e   : > { %s183_s28 = scalar_lea.hbm %s1016_s0, %s513_s11  ;;  %s176_s29 = scalar_lea.vmem [#allocation4], %s497_s20 }
  0x1f   : > { %s186_s30 = sshll.u32 %s176_s29, 4  ;;  %s1047_s9 = smov (%p41_p6, %s1045_s9), 0  ;;  %s187_s30 = int_to_ptr.vmem [resolvable:$true] %s186_s30 }
  0x20   : > { %s184_s5 = sshll.u32 %s183_s28, 4  ;;  %s43_s6 = ssub.s32 %s777_s18, %s1047_s9  ;;  %s185_s5 = int_to_ptr.hbm [resolvable:$true] %s184_s5 }
  0x21   : > { %p46_p5 = scmp.eq.s32.totalorder %s43_s6, 0  ;;  %s173_s8 = scalar_lea.sflag [#allocation5], %s172_s10 }
  0x22   : > { %s784_s17 = smov 128   ;;  %s785_s27 = smov 8  }
  0x23   : > { %s918_s1 = scalar_select %p46_p5, %s761_s14, %s48_s22  }
  0x24   : > { %532 = dma.hbm_to_vmem [thread:$0]  (!%p897_p2), %s185_s5, 1024, %s187_s30, %s173_s8, %s784_s17, %s784_s17, %s785_s27  }
  0x25   : > { %198 = sbr.rel (%p886_p12) target bundleno = 534 (0x216), region = 32  ;;  %s925_s11 = sand.u32 (!%p886_p12), 1, %s757_s13  }
  0x26   : > { %s501_s20 = sshll.u32 (!%p886_p12), %s925_s11, 6  ;;  %s201_s21 = scalar_lea.sflag (!%p886_p12), [#allocation5], %s925_s11 }
  0x27   : > { %s929_s24 = scalar_lea.vmem (!%p886_p12), [#allocation4], %s501_s20 }
  0x2a   : > { %740 = dma.done.wait (%p869_p7), %s201_s21, 1024  }
  0x2b   : > { %742 = vsyncadd (%p869_p7), %s201_s21, 4294966272 }
  0x2c   : > { %744 = dma.done.wait (%p859_p3), [#allocation8], 16  }
  0x2d   : > { %746 = vsyncadd (%p859_p3), [#allocation8], 4294967280  ;;  %p236_p10 = scmp.eq.s32.totalorder %s765_s15, 0  ;;  %s940_s17 = scalar_lea.vmem [#allocation9], %s501_s20 }
  0x2e   : > { %v786_v0 = vmov (%p236_p10), 0.0  }
  0x2f   : > { %241 = sbr.rel (!%p236_p10) target bundleno = 52 (0x34), region = 44  ;;  %242 = vst [vmem:[#allocation2] sm:$0x1] (%p236_p10), %v786_v0 }
  0x34 PF: > { %p505_p11 = scmp.ne.s32.totalorder %s765_s15, 0 }
  0x36   : > { %245 = sbr.rel (%p505_p11) target bundleno = 91 (0x5b), region = 48 }
  0x3b   : > { %v246_v1 = vld [vmem:[%s929_s24] sm:$0xff]  ;;  %v247_v2 = vld [vmem:[%s929_s24 + $0x8] sm:$0xff]  ;;  %v248_v3 = vld [vmem:[%s929_s24 + $0x10] sm:$0xff] }
  0x3c   : > { %v249_v4 = vld [vmem:[%s929_s24 + $0x18] sm:$0xff]  ;;  %v255_v5 = vmul.f32 %v246_v1, %v246_v1  ;;  %v256_v6 = vmul.f32 %v247_v2, %v247_v2  ;;  %v257_v7 = vmul.f32 %v248_v3, %v248_v3  ;;  %v250_v8 = vld [vmem:[%s929_s24 + $0x20] sm:$0xff]  ;;  %v251_v11 = vld [vmem:[%s929_s24 + $0x28] sm:$0xff] }
  0x3d   : > { %v258_v9 = vmul.f32 %v249_v4, %v249_v4  ;;  %v259_v12 = vmul.f32 %v250_v8, %v250_v8  ;;  %v252_v14 = vld [vmem:[%s929_s24 + $0x30] sm:$0xff]  ;;  %v260_v15 = vmul.f32 %v251_v11, %v251_v11  ;;  %v253_v17 = vld [vmem:[%s929_s24 + $0x38] sm:$0xff] }
  0x3e   : > { %v263_v10 = vadd.f32 %v256_v6, %v255_v5  ;;  %v261_v18 = vmul.f32 %v252_v14, %v252_v14  ;;  %v262_v20 = vmul.f32 %v253_v17, %v253_v17  ;;  %v254_v29 = vld [vmem:[#allocation2] sm:$0x1] }
  0x40   : > { %v264_v13 = vadd.f32 %v263_v10, %v257_v7 }
  0x42   : > { %v265_v16 = vadd.f32 %v264_v13, %v258_v9 }
  0x44   : > { %v266_v19 = vadd.f32 %v265_v16, %v259_v12 }
  0x46   : > { %v267_v21 = vadd.f32 %v266_v19, %v260_v15 }
  0x48   : > { %v268_v22 = vadd.f32 %v267_v21, %v261_v18 }
  0x4a   : > { %v269_v23 = vadd.f32 %v268_v22, %v262_v20 }
  0x4c   : > { %v270_v24 = vrot.slane %v269_v23, 4 }
  0x4e   : > { %v271_v25 = vadd.f32 %v270_v24, %v269_v23 }
  0x50   : > { %v272_v26 = vrot.slane %v271_v25, 2 }
  0x52   : > { %v273_v27 = vadd.f32 %v272_v26, %v271_v25 }
  0x54   : > { %v274_v28 = vrot.slane %v273_v27, 1 }
  0x56   : > { %v275_v30 = vadd.f32 %v274_v28, %v273_v27 }
  0x58   : > { %v276_v31 = vadd.f32 %v275_v30, %v254_v29 }
  0x5a   : > { %277 = vst [vmem:[#allocation2] sm:$0x1] %v276_v31 }
  0x5b PF: > { %p278_p3 = scmp.eq.s32.totalorder %s765_s15, 1 }
  0x5c   : > { %s787_s22 = smov (%p278_p3), 32   ;;  %s788_s23 = smov (%p278_p3), 64   ;;  %vm302_vm1 = vcmask (%p278_p3), 1040384   ;;  %v323_v60 = vld [vmem:[#allocation7] sm:$0x1] (%p278_p3) }
  0x5d   : > { %282 = sbr.rel (!%p278_p3) target bundleno = 498 (0x1f2), region = 52 }
  0x61   : > { %v283_v32 = vld [vmem:[#allocation2] sm:$0x1] (%p278_p3) }
  0x62   : > { %284 = vrot.lane.b32.xlu0 %v283_v32, %s787_s22 }
  0xd4   : > { %v285_v33 = vpop.permute.xlu0 %284 }
  0xd5   : > { %v286_v34 = vadd.f32 %v285_v33, %v283_v32 }
  0xd7   : > { %287 = vrot.lane.b32.xlu0 %v286_v34, %s788_s23 }
 0x149   : > { %v288_v35 = vpop.permute.xlu0 %287 }
 0x14a   : > { %v289_v36 = vadd.f32 %v288_v35, %v286_v34 }
 0x14c   : > { %613 = vrsqrt.f32 %v289_v36  ;;  %vm297_vm0 = vcmp.eq.f32.partialorder %v289_v36, inf  ;;  %v300_v44 = vand.u32 2147483648, %v289_v36  ;;  %vm299_vm2 = vcmp.eq.f32.partialorder %v289_v36, 0.0 }
 0x152   : > { %v614_v37 = vpop.eup %613 }
 0x153   : > { %v291_v38 = vmul.f32 %v614_v37, %v289_v36 }
 0x155   : > { %v292_v39 = vmul.f32 %v614_v37, %v291_v38 }
 0x157   : > { %v293_v40 = vmul.f32 0.5, %v292_v39 }
 0x159   : > { %v294_v41 = vsub.f32 1.5, %v293_v40 }
 0x15b   : > { %v295_v42 = vmul.f32 %v614_v37, %v294_v41 }
 0x15d   : > { %v296_v43 = vmul.f32 %v295_v42, %v289_v36 }
 0x15f   : > { %v298_v45 = vsel %vm297_vm0, %v289_v36, %v296_v43 }
 0x160   : > { %v301_v46 = vsel %vm299_vm2, %v300_v44, %v298_v45 }
 0x161   : > { %v303_v47 = vsel %vm302_vm1, %v301_v46, 0.0 }
 0x162   : > { %304 = vadd.xlane.f32.xlu1 %v303_v47 }
 0x1d5   : > { %v305_v48 = vpop.xlane.xlu1 %304 }
 0x1d6   : > { %v306_v49 = vmul.f32 0.0078125, %v305_v48 }
 0x1d8   : > { %v307_v50 = vadd.f32 1e-06, %v306_v49 }
 0x1da   : > { %615 = vrcp.f32 %v307_v50  ;;  %v319_v54 = vand.u32 2147483648, %v307_v50  ;;  %v317_v56 = vand.u32 2147483647, %v307_v50  ;;  %vm313_vm4 = vweird.f32 %v307_v50 }
 0x1dc   : > { %v320_v58 = vor.u32 1.1754944e-38, %v319_v54  ;;  %vm318_vm6 = vcmp.eq.f32.partialorder %v317_v56, 8.507059e+37 }
 0x1e0   : > { %v616_v51 = vpop.eup %615 }
 0x1e1   : > { %v309_v52 = vmul.f32 %v616_v51, %v307_v50  ;;  %vm314_vm3 = vweird.f32 %v616_v51 }
 0x1e2   : > { %vm315_vm5 = vmor %vm313_vm4, %vm314_vm3 }
 0x1e3   : > { %v310_v53 = vsub.f32 1.0, %v309_v52 }
 0x1e5   : > { %v311_v55 = vmul.f32 %v616_v51, %v310_v53 }
 0x1e7   : > { %v312_v57 = vadd.f32 %v616_v51, %v311_v55 }
 0x1e9   : > { %v316_v59 = vsel %vm315_vm5, %v616_v51, %v312_v57 }
 0x1ea   : > { %v321_v61 = vsel %vm318_vm6, %v320_v58, %v316_v59 }
 0x1eb   : > { %v322_v62 = vmul.f32 %v321_v61, %v301_v46 }
 0x1ed   : > { %v324_v63 = vmul.f32 %v323_v60, %v322_v62 }
 0x1ef   : > { %v325_v0 = vadd.f32 1.0, %v324_v63 }
 0x1f1   : > { %326 = vst [vmem:[#allocation3] sm:$0x1] %v325_v0 }
 0x1f2 PF: > { %p507_p7 = scmp.ne.s32.totalorder %s765_s15, 1 }
 0x1f4   : > { %329 = sbr.rel (%p507_p7) target bundleno = 518 (0x206), region = 56 }
 0x1f9   : > { %v330_v1 = vld [vmem:[%s929_s24] sm:$0xff]  ;;  %v617_v2 = vld [vmem:[#allocation3] ss:$0 sm:$0xff]  ;;  %v618_v3 = vld [vmem:[%s1018_s2] ss:$0 sm:$0xff] }
 0x1fa   : > { %v331_v4 = vld [vmem:[%s929_s24 + $0x8] sm:$0xff]  ;;  %v342_v5 = vmul.f32 %v617_v2, %v330_v1  ;;  %v332_v7 = vld [vmem:[%s929_s24 + $0x10] sm:$0xff]  ;;  %v333_v8 = vld [vmem:[%s929_s24 + $0x18] sm:$0xff] }
 0x1fb   : > { %v343_v6 = vmul.f32 %v617_v2, %v331_v4  ;;  %v334_v9 = vld [vmem:[%s929_s24 + $0x20] sm:$0xff]  ;;  %v344_v10 = vmul.f32 %v617_v2, %v332_v7  ;;  %v345_v11 = vmul.f32 %v617_v2, %v333_v8  ;;  %v335_v13 = vld [vmem:[%s929_s24 + $0x28] sm:$0xff]  ;;  %v336_v14 = vld [vmem:[%s929_s24 + $0x30] sm:$0xff] }
 0x1fc   : > { %v346_v12 = vmul.f32 %v617_v2, %v334_v9  ;;  %v337_v15 = vld [vmem:[%s929_s24 + $0x38] sm:$0xff]  ;;  %v354_v16 = vadd.f32 %v618_v3, %v342_v5  ;;  %v347_v18 = vmul.f32 %v617_v2, %v335_v13  ;;  %v348_v19 = vmul.f32 %v617_v2, %v336_v14 }
 0x1fd   : > { %v355_v17 = vadd.f32 %v618_v3, %v343_v6  ;;  %v356_v20 = vadd.f32 %v618_v3, %v344_v10  ;;  %v357_v21 = vadd.f32 %v618_v3, %v345_v11  ;;  %v349_v22 = vmul.f32 %v617_v2, %v337_v15 }
 0x1fe   : > { %362 = vst [vmem:[%s940_s17] sm:$0xff] %v354_v16  ;;  %v358_v23 = vadd.f32 %v618_v3, %v346_v12  ;;  %v359_v24 = vadd.f32 %v618_v3, %v347_v18  ;;  %v360_v25 = vadd.f32 %v618_v3, %v348_v19 }
 0x1ff   : > { %363 = vst [vmem:[%s940_s17 + $0x8] sm:$0xff] %v355_v17  ;;  %v361_v26 = vadd.f32 %v618_v3, %v349_v22 }
 0x200   : > { %364 = vst [vmem:[%s940_s17 + $0x10] sm:$0xff] %v356_v20 }
 0x201   : > { %365 = vst [vmem:[%s940_s17 + $0x18] sm:$0xff] %v357_v21 }
 0x202   : > { %366 = vst [vmem:[%s940_s17 + $0x20] sm:$0xff] %v358_v23 }
 0x203   : > { %367 = vst [vmem:[%s940_s17 + $0x28] sm:$0xff] %v359_v24 }
 0x204   : > { %368 = vst [vmem:[%s940_s17 + $0x30] sm:$0xff] %v360_v25 }
 0x205   : > { %369 = vst [vmem:[%s940_s17 + $0x38] sm:$0xff] %v361_v26 }
 0x206 PF: > { %s516_s15 = sshll.u32 %s769_s16, 6  ;;  %s386_s10 = sshll.u32 %s940_s17, 4  ;;  %s387_s10 = int_to_ptr.vmem [resolvable:$true] %s386_s10 }
 0x207   : > { %s385_s8 = scalar_lea.hbm %s1019_s3, %s516_s15  ;;  %s371_s29 = scalar_lea.sflag [#allocation6], %s925_s11 }
 0x208   : > { %s388_s28 = sshll.u32 %s385_s8, 4  ;;  %s699_s16 = scalar_lea.hbm %s1019_s3, 128  ;;  %s389_s28 = int_to_ptr.hbm [resolvable:$true] %s388_s28 }
 0x209   : > { %s693_s30 = sshra.s32 %s389_s28, 4  ;;  %s694_s30 = int_to_ptr.hbm [resolvable:$true] %s693_s30 }
 0x20a   : > { %s695_s5 = scalar_lea.hbm %s694_s30, 64  ;;  %p700_p1 = scmp.lt.s32.totalorder %s694_s30, %s1019_s3 }
 0x20b   : > { %p696_p12 = scmp.ne.s32.totalorder %s694_s30, %s695_s5  ;;  %p701_p2 = scmp.lt.s32.totalorder %s699_s16, %s695_s5 }
 0x20d   : > { %p697_p13 = pnand %p696_p12, %p873_p8  ;;  %p702_p4 = por %p701_p2, %p700_p1 }
 0x20f   : > { %p698_p0 = pneg %p697_p13 }
 0x211   : > { %p703_p6 = pnand %p702_p4, %p698_p0 }
 0x213   : > { %706 = shalt.err (!%p703_p6)
}
 0x214   : > { %s789_s11 = smov 128   ;;  %s790_s17 = smov 8  }
 0x215   : > { %523 = dma.vmem_to_hbm [thread:$0]  (%p873_p8), %s387_s10, 1024, %s389_s28, %s371_s29, %s789_s11, %s789_s11, %s790_s17  }
 0x216 PF: > { %p540_p5 = scmp.ge.s32.totalorder %s781_s19, 2  ;;  %s403_s23 = sand.u32 1, %s753_s12  }
 0x217   : > { %s404_s25 = scalar_lea.sflag [#allocation6], %s403_s23 }
 0x218   : > { %p534_p10 = pnand %p540_p5, %p877_p9 }
 0x21a   : > { %p535_p11 = pneg %p534_p10 }
 0x21c   : > { %748 = dma.done.wait (%p535_p11), %s404_s25, 1024  }
 0x21d   : > { %750 = vsyncadd (%p535_p11), %s404_s25, 4294966272  ;;  %s20_s19 = sadd.s32 1, %s781_s19   ;;  %s1035_s15 = sld [smem:[#allocation13_spill]] }
 0x21e   : > { %p17_p3 = scmp.ge.s32.totalorder %s20_s19, 6   ;;  %s1036_s17 = sld [smem:[#allocation15_spill]] }
 0x21f   : > { %s1037_s12 = smov %s757_s13  ;;  %s1038_s13 = smov %s761_s14 }
 0x220   : > { %s1039_s14 = smov %s918_s1  ;;  %s1040_s16 = smov %s777_s18 }
 0x221   : > { %s1041_s18 = smov %s1047_s9  ;;  %19 = sbr.rel (!%p17_p3) target bundleno = 10 (0xa), region = 97 }
 0x226   :  { %410 = vsyncpa [#allocation5], 1 }
 0x227   :  { %412 = vsyncpa [#allocation5 + $0x1], 1 }
 0x228   :  { %413 = vsyncpa [#allocation8], 1 }
 0x229   :  { %414 = vsyncpa [#allocation6], 1 }
 0x22a   :  { %416 = vsyncpa [#allocation6 + $0x1], 1 }

</bundles_post_ra>
